<compile_context>
chip_gen: v6e
topology: v6e:2x2x1
jax: 0.10.0
libtpu: 0.0.40
codegen_flags: <defaults>
</compile_context>

<pallas_src>
import numpy as np
import jax
import jax.numpy as jnp
from jax.experimental import pallas as pl
from jax.experimental.pallas import tpu as pltpu


# ----------------------------------------------------------------------------
# Host-side constant construction (mirrors propagator / gen_f_kernel glue).
# ----------------------------------------------------------------------------
def propagator_np(prop, lam, total_size, dx):
    x = np.arange(-(total_size - 1), total_size, 1, dtype=np.float64) * dx
    r = np.sqrt(x * x + prop * prop)
    G = prop / r**2 * (1.0 / (lam * 1j)) * np.exp(1j * 2.0 * np.pi * r / lam)
    return G  # complex128, length 2*total_size - 1


def packed_conv_matrix(prop, lam, total_size, dx, tn):
    """Dense Toeplitz equivalent of fourier_conv1D, packed per output column tile.

    M[m, n] = G[(n - m) + (total_size - 1)]  so  Ef_row = E_row @ (Mr + 1j*Mi).
    Columns are packed tile-wise as [.. | Mr_j | Mi_j | ..] so one (N, 2*tn)
    BlockSpec fetch delivers both the real and imaginary columns of tile j.
    """
    G = propagator_np(prop, lam, total_size, dx)
    idx = np.arange(total_size)
    offset = idx[None, :] - idx[:, None] + (total_size - 1)   # [m, n] -> n - m shifted
    M = G[offset]
    mr = M.real.astype(np.float32)
    mi = M.imag.astype(np.float32)
    n_tiles = total_size // tn
    packed = np.empty((total_size, 2 * total_size), dtype=np.float32)
    for j in range(n_tiles):
        packed[:, 2 * j * tn:       2 * j * tn + tn] = mr[:, j * tn:(j + 1) * tn]
        packed[:, 2 * j * tn + tn:  2 * (j + 1) * tn] = mi[:, j * tn:(j + 1) * tn]
    return packed


def pick_col_tile(n, dtype_bytes=2, rhs_budget_bytes=24 * 1024 * 1024):
    """Pick (tn, buffer_count) for lane-dense output column tiles.

    * Accounts for the buffer_count copies of the (n, 2*tn) packed RHS block that the
      Pallas pipeline keeps live in VMEM.  24 MiB budget is safe on every generation
      (v7x: 64 MiB physical / 32 MiB default scoped; v5e/v6e: 128 MiB physical).
    * Never falls back to tn == n; raises if even tn=128 does not fit.
    * Prefers an even tile count so the "parallel" axis splits evenly over v7x's 2 TCs.
    """
    candidates = []
    for tn in (2048, 1024, 512, 256, 128):
        if tn > n or n % tn != 0:
            continue
        n_tiles = n // tn
        buf = 3 if n_tiles >= 4 else 2           # deeper pipelining only on long grids
        rhs_bytes = buf * n * (2 * tn) * dtype_bytes
        if rhs_bytes <= rhs_budget_bytes:
            candidates.append((tn, buf))
    if not candidates:
        raise ValueError(
            f"No column tile fits the VMEM budget for N={n}; "
            "generate Toeplitz blocks in-kernel instead of streaming the dense matrix.")
    for tn, buf in candidates:                   # prefer even tile counts (>= 2)
        if (n // tn) % 2 == 0:
            return tn, buf
    return candidates[0]


# ----------------------------------------------------------------------------
# Kernel 1 (one-shot): E = E0 * exp(i*phase)  ->  (8, N) bf16 LHS [Re(E); Im(E); 0..]
# ----------------------------------------------------------------------------
def modulate_kernel(e0_ref, phase_ref, lhs_ref):
    ph = phase_ref[...]                       # (1, N) f32
    c = jnp.cos(ph)
    s = jnp.sin(ph)
    e0r = e0_ref[0:1, :]                      # (1, N)
    e0i = e0_ref[1:2, :]
    er = e0r * c - e0i * s
    ei = e0r * s + e0i * c
    zeros = jnp.zeros((6, er.shape[-1]), jnp.float32)
    lhs = jnp.concatenate([er, ei, zeros], axis=0)      # (8, N) f32
    lhs_ref[...] = lhs.astype(jnp.bfloat16)


# ----------------------------------------------------------------------------
# Kernel 2 (tiled grid): fused complex Toeplitz matmul + |.|^2 per column tile
# ----------------------------------------------------------------------------
def toeplitz_if_kernel(lhs_ref, p_ref, if_ref):
    # lhs_ref: (8, N) bf16, constant block -> stays resident across the grid.
    # p_ref:   (N, 2*TN) bf16 packed [Mr_j | Mi_j]   (streamed, double/triple buffered)
    r = jnp.dot(lhs_ref[...], p_ref[...],
                preferred_element_type=jnp.float32)      # (8, 2*TN) f32

    tn = if_ref.shape[-1]
    efr = r[0:1, :tn] - r[1:2, tn:]           # er@Mr - ei@Mi
    efi = r[0:1, tn:] + r[1:2, :tn]           # er@Mi + ei@Mr

    if_ref[...] = efr * efr + efi * efi       # If = |Ef|^2


def ideal_model_forward(e0, phase, packed_m, tn, buf_count=2):
    n = phase.shape[-1]
    assert n % 128 == 0 and n % tn == 0
    n_tiles = n // tn

    # --- stage 1: one-shot phase modulation / LHS assembly (no per-tile recompute) ---
    lhs = pl.pallas_call(
        modulate_kernel,
        out_shape=jax.ShapeDtypeStruct((8, n), jnp.bfloat16),
    )(e0, phase)

    # --- VMEM accounting: buffered RHS blocks dominate; LHS / output tiles are tiny ---
    rhs_bytes = buf_count * n * (2 * tn) * 2
    lhs_bytes = 2 * 8 * n * 2
    out_bytes = 2 * tn * 4
    vmem_limit = rhs_bytes + lhs_bytes + out_bytes + (2 << 20)      # slack
    vmem_limit = int(min(max(vmem_limit, 32 << 20), 60 << 20))      # < v7x 64 MiB phys

    cost = pl.CostEstimate(
        flops=2 * 8 * n * (2 * n),
        transcendentals=0,
        bytes_accessed=n * (2 * n) * 2 + 8 * n * 2 + n * 4,
    )

    rhs_kwargs = {"pipeline_mode": pl.Buffered(buf_count)} if buf_count > 2 else {}

    return pl.pallas_call(
        toeplitz_if_kernel,
        out_shape=jax.ShapeDtypeStruct((1, n), jnp.float32),
        grid_spec=pltpu.PrefetchScalarGridSpec(
            num_scalar_prefetch=0,
            grid=(n_tiles,),
            in_specs=[
                pl.BlockSpec((8, n), lambda j: (0, 0)),                   # resident LHS
                pl.BlockSpec((n, 2 * tn), lambda j: (0, j), **rhs_kwargs),  # [Mr_j|Mi_j]
            ],
            out_specs=pl.BlockSpec((1, tn), lambda j: (0, j)),
        ),
        compiler_params=pltpu.CompilerParams(
            dimension_semantics=("parallel",),
            vmem_limit_bytes=vmem_limit),
        cost_estimate=cost,
    )(lhs, packed_m)


# ----------------------------------------------------------------------------
# Driver
# ----------------------------------------------------------------------------
if __name__ == "__main__":
    total_size = 1024
    prop_dis = 50.0
    lam = 1.0
    dx = 0.25

    key = jax.random.PRNGKey(0)
    k_phase, k_er, k_ei = jax.random.split(key, 3)
    phase = jax.random.uniform(k_phase, (1, total_size), jnp.float32,
                               minval=0.0, maxval=2.0 * np.pi)
    e0r = jax.random.normal(k_er, (1, total_size), jnp.float32)
    e0i = jax.random.normal(k_ei, (1, total_size), jnp.float32)
    e0 = jnp.concatenate([e0r, e0i], axis=0)              # (2, N): [Re(E0); Im(E0)]

    tn, buf_count = pick_col_tile(total_size)
    packed_np = packed_conv_matrix(prop_dis, lam, total_size, dx, tn)
    packed = jnp.asarray(packed_np, dtype=jnp.bfloat16)   # bf16 HBM/VMEM matrix stream

    out = ideal_model_forward(e0, phase, packed, tn, buf_count)
    out = jax.block_until_ready(out)

    # Reference: original FFT-based path (pad -> fft -> * f_kernel -> ifft -> crop[:N]).
    G = propagator_np(prop_dis, lam, total_size, dx)
    f_kernel = np.fft.fft(np.fft.ifftshift(G))
    E0 = np.asarray(e0r, np.float64)[0] + 1j * np.asarray(e0i, np.float64)[0]
    E = E0 * np.exp(1j * np.asarray(phase, np.float64)[0])
    E_pad = np.concatenate([E, np.zeros(total_size - 1, dtype=E.dtype)])
    Ef = np.fft.ifft(np.fft.fft(E_pad) * f_kernel)[:total_size]
    If_ref = np.abs(Ef) ** 2

    np.testing.assert_allclose(np.asarray(out)[0], If_ref, rtol=5e-2, atol=2e-3)
    print("KERNEL_OK")
</pallas_src>

<mosaic_0001>
module attributes {stable_mosaic.version = 11 : i64} {
  func.func @modulate_kernel(%arg0: memref<2x1024xf32, #tpu.memory_space<vmem>>, %arg1: memref<1x1024xf32, #tpu.memory_space<vmem>>, %arg2: memref<8x1024xbf16, #tpu.memory_space<vmem>>) attributes {dimension_semantics = [], scalar_prefetch = 0 : i64, scratch_operands = 0 : i64, tpu.core_type = #tpu.core_type<tc>} {
    %c0 = arith.constant 0 : index
    %c0_0 = arith.constant 0 : index
    %0 = vector.load %arg1[%c0, %c0_0] : memref<1x1024xf32, #tpu.memory_space<vmem>>, vector<1x1024xf32>
    %1 = math.cos %0 : vector<1x1024xf32>
    %2 = math.sin %0 : vector<1x1024xf32>
    %c0_1 = arith.constant 0 : index
    %c0_2 = arith.constant 0 : index
    %3 = vector.load %arg0[%c0_1, %c0_2] : memref<2x1024xf32, #tpu.memory_space<vmem>>, vector<1x1024xf32>
    %c1 = arith.constant 1 : index
    %c0_3 = arith.constant 0 : index
    %4 = vector.load %arg0[%c1, %c0_3] : memref<2x1024xf32, #tpu.memory_space<vmem>>, vector<1x1024xf32>
    %5 = arith.mulf %3, %1 : vector<1x1024xf32>
    %6 = arith.mulf %4, %2 : vector<1x1024xf32>
    %7 = arith.subf %5, %6 : vector<1x1024xf32>
    %8 = arith.mulf %3, %2 : vector<1x1024xf32>
    %9 = arith.mulf %4, %1 : vector<1x1024xf32>
    %10 = arith.addf %8, %9 : vector<1x1024xf32>
    %cst = arith.constant 0.000000e+00 : f32
    %11 = vector.broadcast %cst : f32 to vector<6x1024xf32>
    %12 = tpu.concatenate %7, %10, %11 in 0 : vector<1x1024xf32>, vector<1x1024xf32>, vector<6x1024xf32> -> vector<8x1024xf32>
    %13 = arith.truncf %12 : vector<8x1024xf32> to vector<8x1024xbf16>
    %c0_4 = arith.constant 0 : index
    %c0_5 = arith.constant 0 : index
    %14 = vector.load %arg2[%c0_4, %c0_5] : memref<8x1024xbf16, #tpu.memory_space<vmem>>, vector<8x1024xbf16>
    tpu.vector_store %arg2[%c0_4, %c0_5], %13 {strides = array<i32>} : memref<8x1024xbf16, #tpu.memory_space<vmem>>, vector<8x1024xbf16>,
    return
  }
}

</mosaic_0001>

<bundles_post_ra>
// kernel: tpu_custom_call.1
= control target key start
LH: loop header
LB: loop body
LE: loop exit
PB: predicated region body
PF: predicated region fallthrough
CT: control target
= control target key end

     0   :  { %7 = vsyncpa [#allocation3], 0  ;;  %s574_s0 = inlined_call_operand.hbm [shape: f32[2,1024], index: 0, kind: input, shape index: {}]   ;;  %s575_s1 = inlined_call_operand.hbm [shape: f32[1,1024], index: 1, kind: input, shape index: {}]   ;;  %s576_s2 = inlined_call_operand.hbm [shape: bf16[8,1024], index: 2, kind: output, shape index: {}]  }
   0x1   :  { %8 = vsyncpa [#allocation6], 0 }
   0x2   :  { %9 = vsyncpa [#allocation4], 0  ;;  %s504_s9 = smov [#allocation2]   ;;  %s505_s11 = smov [#allocation5]  }
   0x3   :  { %s16_s10 = sshll.u32 %s504_s9, 4  ;;  %s26_s12 = sshll.u32 %s505_s11, 4  ;;  %s17_s10 = int_to_ptr.vmem [resolvable:$true] %s16_s10  ;;  %s27_s12 = int_to_ptr.vmem [resolvable:$true] %s26_s12 }
   0x4   :  { %s446_s13 = scalar_lea.vmem %s17_s10, 256  ;;  %p451_p1 = scmp.lt.s32.totalorder %s17_s10, %s17_s10 }
   0x5   :  { %p447_p0 = scmp.ne.s32.totalorder %s17_s10, %s446_s13  ;;  %p452_p2 = scmp.lt.s32.totalorder %s446_s13, %s446_s13 }
   0x7   :  { %p453_p3 = por %p452_p2, %p451_p1 }
   0x9   :  { %p454_p4 = pnand %p453_p3, %p447_p0 }
   0xb   :  { %457 = shalt.err (!%p454_p4)
}
   0xc   :  { %19 = dma.hbm_to_vmem [thread:$0]  %s574_s0, 256, %s17_s10, [#allocation3]  }
   0xd   :  { %s466_s16 = scalar_lea.vmem %s27_s12, 128  ;;  %p471_p6 = scmp.lt.s32.totalorder %s27_s12, %s27_s12 }
   0xe   :  { %p467_p5 = scmp.ne.s32.totalorder %s27_s12, %s466_s16  ;;  %p472_p7 = scmp.lt.s32.totalorder %s466_s16, %s466_s16 }
  0x10   :  { %p473_p8 = por %p472_p7, %p471_p6 }
  0x12   :  { %p474_p9 = pnand %p473_p8, %p467_p5 }
  0x14   :  { %477 = shalt.err (!%p474_p9)
}
  0x15   :  { %29 = dma.hbm_to_vmem [thread:$0]  %s575_s1, 128, %s27_s12, [#allocation6]  }
  0x16   :  { %498 = dma.done.wait [#allocation3], 256  }
  0x17   :  { %499 = vsyncadd [#allocation3], 4294967040 }
  0x18   :  { %500 = dma.done.wait [#allocation6], 128  }
  0x19   :  { %501 = vsyncadd [#allocation6], 4294967168  ;;  %v534_v0 = vld [vmem:[#allocation5] sm:$0xff]  ;;  %v506_v12 = vmov 683565275   ;;  %s512_s0 = smov [#allocation7]  }
  0x1a   :  { %v40_v1 = vand.u32 2139095040, %v534_v0  ;;  %v37_v3 = vand.u32 2147483647, %v534_v0  ;;  %v507_v14 = vmov 2475754826   ;;  %vm39_vm7 = vcmp.lt.s32.totalorder %v534_v0, 0 }
  0x1b   :  { %v508_v16 = vmov 2131351028   ;;  %v509_v18 = vmov 2102212464   ;;  %v510_v20 = vmov 920167782   ;;  %vm129_vm15 = vweird.f32 %v534_v0 }
  0x1c   :  { %v41_v2 = vshrl.u32 %v40_v1, 23  ;;  %v44_v6 = vand.u32 8388607, %v37_v3  ;;  %v511_v27 = vmov 1326507024   ;;  %s395_s1 = sshll.u32 %s512_s0, 4  ;;  %s396_s1 = int_to_ptr.vmem [resolvable:$true] %s395_s1 }
  0x1d   :  { %vm38_vm8 = vcmp.le.f32.partialorder %v37_v3, 0.7853982  ;;  %s478_s19 = scalar_lea.vmem %s396_s1, 512  ;;  %p483_p11 = scmp.lt.s32.totalorder %s396_s1, %s396_s1 }
  0x1e   :  { %v405_v4 = vadd.s32 4294967169, %v41_v2  ;;  %v45_v9 = vor.u32 8388608, %v44_v6  ;;  %p479_p10 = scmp.ne.s32.totalorder %s396_s1, %s478_s19  ;;  %p484_p12 = scmp.lt.s32.totalorder %s478_s19, %s478_s19 }
  0x20   :  { %v47_v5 = vadd.s32 1, %v405_v4  ;;  %v85_v29 = vshll.u32 %v45_v9, 8  ;;  %p485_p13 = por %p484_p12, %p483_p11 }
  0x22   :  { %vm48_vm0 = vcmp.gt.s32.totalorder %v47_v5, 0  ;;  %p486_p0 = pnand %p485_p13, %p479_p10 }
  0x23   :  { %v49_v7 = vsel %vm48_vm0, %v47_v5, 0  ;;  %vm335_vm0 = vcmask 1040384  }
  0x24   :  { %v51_v8 = vand.u32 31, %v49_v7  ;;  %v50_v10 = vshrl.u32 %v49_v7, 5 }
  0x26   :  { %v52_v11 = vsub.s32 32, %v51_v8  ;;  %v54_v13 = vshll.u32 %v506_v12, %v51_v8  ;;  %v57_v15 = vshll.u32 %v507_v14, %v51_v8  ;;  %v60_v17 = vshll.u32 %v508_v16, %v51_v8 }
  0x27   :  { %v63_v19 = vshll.u32 %v509_v18, %v51_v8  ;;  %v66_v21 = vshll.u32 %v510_v20, %v51_v8  ;;  %vm69_vm1 = vcmp.lt.s32.totalorder %v50_v10, 1  ;;  %vm72_vm2 = vcmp.lt.s32.totalorder %v50_v10, 4 }
  0x28   :  { %v53_v22 = vshrl.u32 %v506_v12, %v52_v11  ;;  %v55_v23 = vshrl.u32 %v507_v14, %v52_v11  ;;  %v58_v24 = vshrl.u32 %v508_v16, %v52_v11  ;;  %v61_v25 = vshrl.u32 %v509_v18, %v52_v11 }
  0x29   :  { %v64_v26 = vshrl.u32 %v510_v20, %v52_v11  ;;  %v67_v28 = vshrl.u32 %v511_v27, %v52_v11  ;;  %vm70_vm3 = vcmp.lt.s32.totalorder %v50_v10, 2  ;;  %vm71_vm4 = vcmp.lt.s32.totalorder %v50_v10, 3 }
  0x2a   :  { %v56_v30 = vor.u32 %v55_v23, %v54_v13  ;;  %v59_v31 = vor.u32 %v58_v24, %v57_v15  ;;  %v62_v32 = vor.u32 %v61_v25, %v60_v17  ;;  %v254_v23 = vlaneseq }
  0x2b   :  { %v65_v33 = vor.u32 %v64_v26, %v63_v19  ;;  %v68_v34 = vor.u32 %v67_v28, %v66_v21 }
  0x2c   :  { %v73_v35 = vsel %vm69_vm1, %v53_v22, %v56_v30  ;;  %v74_v36 = vsel %vm72_vm2, %v62_v32, 2102212464  ;;  %v77_v37 = vsel %vm69_vm1, %v56_v30, %v59_v31  ;;  %v81_v38 = vsel %vm69_vm1, %v59_v31, %v62_v32 }
  0x2d   :  { %v75_v39 = vsel %vm71_vm4, %v59_v31, %v74_v36  ;;  %v78_v40 = vsel %vm72_vm2, %v65_v33, 920167782  ;;  %v82_v41 = vsel %vm72_vm2, %v68_v34, 1326507024  ;;  %v255_v27 = vshrl.u32 %v254_v23, 7 }
  0x2e   :  { %v79_v42 = vsel %vm71_vm4, %v62_v32, %v78_v40  ;;  %v83_v43 = vsel %vm71_vm4, %v65_v33, %v82_v41  ;;  %v76_v44 = vsel %vm70_vm3, %v73_v35, %v75_v39  ;;  %v244_v32 = vld [vmem:[#allocation2] ss:$2 sm:$0xff]  ;;  %v246_v33 = vld [vmem:[#allocation2 + $0x1] ss:$2 sm:$0xff]  ;;  %vm344_vm1 = vcmask 1041408  }
  0x2f   :  { %v80_v45 = vsel %vm70_vm3, %v77_v37, %v79_v42  ;;  %v84_v46 = vsel %vm70_vm3, %v81_v38, %v83_v43  ;;  %v92_v51 = vmul.u32 %v85_v29, %v76_v44  ;;  %v256_v38 = vsub.s32 0, %v255_v27 }
  0x30   :  { %v540_v47 = vmul.u32.u64.low %v85_v29, %v84_v46  ;;  %v541_v48 = vmul.u32.u64.high %v85_v29, %v84_v46, %v540_v47  ;;  %v543_v49 = vmul.u32.u64.low %v85_v29, %v80_v45  ;;  %v544_v50 = vmul.u32.u64.high %v85_v29, %v80_v45, %v543_v49 }
  0x31   :  { %v260_v39 = vsub.s32 1, %v255_v27  ;;  %v264_v44 = vsub.s32 2, %v255_v27  ;;  %v268_v45 = vsub.s32 3, %v255_v27  ;;  %v272_v47 = vsub.s32 4, %v255_v27 }
  0x32   :  { %vm94_vm5 = vc.u32 %v541_v48, %v543_v49  ;;  %v95_v52 = vadd.s32 1, %v544_v50  ;;  %v93_v63 = vadd.s32 %v543_v49, %v541_v48  ;;  %v276_v48 = vsub.s32 5, %v255_v27 }
  0x33   :  { %v280_v49 = vsub.s32 6, %v255_v27 }
  0x34   :  { %v96_v53 = vsel %vm94_vm5, %v95_v52, %v544_v50  ;;  %v284_v50 = vsub.s32 7, %v255_v27 }
  0x35   :  { %v97_v54 = vadd.s32 %v96_v53, %v92_v51 }
  0x37   :  { %v98_v55 = vadd.s32 536870912, %v97_v54 }
  0x39   :  { %v99_v56 = vshrl.u32 %v98_v55, 30 }
  0x3b   :  { %v100_v57 = vshll.u32 %v99_v56, 30  ;;  %v123_v14 = vsub.s32 4, %v99_v56 }
  0x3d   :  { %v101_v58 = vsub.s32 %v97_v54, %v100_v57  ;;  %v124_v17 = vsel %vm39_vm7, %v123_v14, %v99_v56 }
  0x3e   :  { %v126_v19 = vsel %vm38_vm8, 0, %v124_v17 }
  0x3f   :  { %v103_v59 = vsub.s32 0, %v101_v58  ;;  %v233_v20 = vadd.s32 3, %v126_v19  ;;  %v130_v21 = vand.u32 3, %v126_v19 }
  0x41   :  { %v406_v60 = vmin.u32 %v103_v59, %v101_v58  ;;  %v234_v22 = vand.u32 3, %v233_v20  ;;  %vm135_vm9 = vcmp.eq.s32.totalorder %v130_v21, 2  ;;  %vm132_vm11 = vcmp.eq.s32.totalorder %v130_v21, 0 }
  0x42   :  { %vm131_vm13 = vcmp.lt.s32.totalorder %v130_v21, 2 }
  0x43   :  { %v105_v61 = vclz %v406_v60  ;;  %vm239_vm10 = vcmp.eq.s32.totalorder %v234_v22, 2  ;;  %vm236_vm12 = vcmp.eq.s32.totalorder %v234_v22, 0  ;;  %vm235_vm14 = vcmp.lt.s32.totalorder %v234_v22, 2 }
  0x45   :  { %v407_v62 = vadd.s32 4294967294, %v105_v61 }
  0x47   :  { %vm408_vm6 = vcmp.lt.s32.totalorder %v407_v62, 0 }
  0x48   :  { %v108_v1 = vsel %vm408_vm6, 0, %v407_v62 }
  0x49   :  { %v109_v2 = vsub.s32 32, %v108_v1  ;;  %v110_v4 = vshll.u32 %v101_v58, %v108_v1  ;;  %v113_v5 = vsub.s32 4294967266, %v108_v1 }
  0x4b   :  { %v111_v6 = vshrl.u32 %v93_v63, %v109_v2  ;;  %v114_v7 = vadd.s32 127, %v113_v5 }
  0x4d   :  { %v112_v8 = vor.u32 %v111_v6, %v110_v4  ;;  %v115_v9 = vshll.u32 %v114_v7, 23 }
  0x4f   :  { %v116_v10 = vor.u32 4788187, %v115_v9  ;;  %v119_v11 = vcvt.s32.f32 %v112_v8 }
  0x51   :  { %v117_v12 = vand.u32 2147483647, %v116_v10 }
  0x53   :  { %v120_v13 = vmul.f32 %v119_v11, %v117_v12 }
  0x55   :  { %v121_v15 = vxor.u32 2147483648, %v120_v13 }
  0x57   :  { %v122_v16 = vsel %vm39_vm7, %v121_v15, %v120_v13 }
  0x58   :  { %v125_v18 = vsel %vm38_vm8, %v534_v0, %v122_v16 }
  0x59   :  { %434 = vcosq.f32 %v125_v18 }
  0x5a   :  { %436 = vsinq.f32 %v125_v18 }
  0x66   :  { %v435_v24 = vpop.eup %434 }
  0x67   :  { %v437_v25 = vpop.eup %436  ;;  %v136_v26 = vxor.u32 2147483648, %v435_v24 }
  0x68   :  { %v133_v3 = vxor.u32 2147483648, %v437_v25 }
  0x69   :  { %v137_v28 = vsel %vm135_vm9, %v136_v26, %v437_v25  ;;  %v241_v29 = vsel %vm239_vm10, %v136_v26, %v437_v25 }
  0x6a   :  { %v134_v30 = vsel %vm132_vm11, %v435_v24, %v133_v3  ;;  %v238_v31 = vsel %vm236_vm12, %v435_v24, %v133_v3 }
  0x6b   :  { %v138_v34 = vsel %vm131_vm13, %v134_v30, %v137_v28  ;;  %v242_v35 = vsel %vm235_vm14, %v238_v31, %v241_v29 }
  0x6c   :  { %v139_v36 = vsel %vm129_vm15, nan, %v138_v34  ;;  %v243_v37 = vsel %vm129_vm15, nan, %v242_v35 }
  0x6d   :  { %v247_v40 = vmul.f32 %v244_v32, %v139_v36  ;;  %v248_v41 = vmul.f32 %v246_v33, %v243_v37  ;;  %v250_v42 = vmul.f32 %v244_v32, %v243_v37  ;;  %v251_v43 = vmul.f32 %v246_v33, %v139_v36 }
  0x6f   :  { %v249_v46 = vsub.f32 %v247_v40, %v248_v41  ;;  %v252_v0 = vadd.f32 %v251_v43, %v250_v42 }
  0x71   :  { %v257_v51 = vrot.slane %v249_v46, %v256_v38  ;;  %v261_v52 = vrot.slane %v249_v46, %v260_v39  ;;  %v298_v53 = vrot.slane %v252_v0, %v256_v38  ;;  %v302_v54 = vrot.slane %v252_v0, %v260_v39 }
  0x72   :  { %v265_v55 = vrot.slane %v249_v46, %v264_v44  ;;  %v269_v56 = vrot.slane %v249_v46, %v268_v45  ;;  %v306_v57 = vrot.slane %v252_v0, %v264_v44  ;;  %v310_v58 = vrot.slane %v252_v0, %v268_v45 }
  0x73   :  { %v336_v59 = vsel %vm335_vm0, %v257_v51, %v298_v53  ;;  %v337_v60 = vsel %vm335_vm0, %v261_v52, %v302_v54  ;;  %v273_v61 = vrot.slane %v249_v46, %v272_v47  ;;  %v277_v62 = vrot.slane %v249_v46, %v276_v48 }
  0x74   :  { %v345_v63 = vsel %vm344_vm1, %v336_v59, 0.0  ;;  %v346_v1 = vsel %vm344_vm1, %v337_v60, 0.0  ;;  %v338_v2 = vsel %vm335_vm0, %v265_v55, %v306_v57  ;;  %v339_v4 = vsel %vm335_vm0, %v269_v56, %v310_v58 }
  0x75   :  { %v417_v5 = vpack.c.bf16 %v346_v1, %v345_v63  ;;  %v347_v6 = vsel %vm344_vm1, %v338_v2, 0.0  ;;  %v348_v7 = vsel %vm344_vm1, %v339_v4, 0.0  ;;  %v314_v8 = vrot.slane %v252_v0, %v272_v47 }
  0x76   :  { %v418_v9 = vpack.c.bf16 %v348_v7, %v347_v6  ;;  %v318_v10 = vrot.slane %v252_v0, %v276_v48  ;;  %v281_v11 = vrot.slane %v249_v46, %v280_v49  ;;  %v285_v12 = vrot.slane %v249_v46, %v284_v50 }
  0x77   :  { %385 = vst [vmem:[#allocation7] sm:$0xff] %v417_v5  ;;  %v340_v13 = vsel %vm335_vm0, %v273_v61, %v314_v8  ;;  %v322_v14 = vrot.slane %v252_v0, %v280_v49  ;;  %v326_v15 = vrot.slane %v252_v0, %v284_v50 }
  0x78   :  { %386 = vst [vmem:[#allocation7 + $0x8] sm:$0xff] %v418_v9  ;;  %v341_v16 = vsel %vm335_vm0, %v277_v62, %v318_v10  ;;  %v349_v17 = vsel %vm344_vm1, %v340_v13, 0.0 }
  0x79   :  { %v350_v18 = vsel %vm344_vm1, %v341_v16, 0.0  ;;  %v342_v19 = vsel %vm335_vm0, %v281_v11, %v322_v14  ;;  %v343_v20 = vsel %vm335_vm0, %v285_v12, %v326_v15 }
  0x7a   :  { %v419_v21 = vpack.c.bf16 %v350_v18, %v349_v17  ;;  %v351_v22 = vsel %vm344_vm1, %v342_v19, 0.0  ;;  %v352_v23 = vsel %vm344_vm1, %v343_v20, 0.0 }
  0x7b   :  { %v420_v24 = vpack.c.bf16 %v352_v23, %v351_v22 }
  0x7c   :  { %387 = vst [vmem:[#allocation7 + $0x10] sm:$0xff] %v419_v21 }
  0x7d   :  { %388 = vst [vmem:[#allocation7 + $0x18] sm:$0xff] %v420_v24 }
  0x7e   :  { %489 = shalt.err (!%p486_p0)
}
  0x7f   :  { %398 = dma.vmem_to_hbm [thread:$0]  %s396_s1, 512, %s576_s2, [#allocation4]  }
  0x80   :  { %502 = dma.done.wait [#allocation4], 512  }
  0x81   :  { %503 = vsyncadd [#allocation4], 4294966784 }
  0x82   :  { %402 = vsyncpa [#allocation3], 1 }
  0x83   :  { %403 = vsyncpa [#allocation6], 1 }
  0x84   :  { %404 = vsyncpa [#allocation4], 1 }

</bundles_post_ra>
